<compile_context>
chip_gen: v6e
topology: v6e:2x2x1
jax: 0.10.0
libtpu: 0.0.40
codegen_flags: <defaults>
</compile_context>

<pallas_src>
import functools

import jax
import jax.numpy as jnp
from jax.experimental import pallas as pl
from jax.experimental.pallas import tpu as pltpu


def _dice_loss_kernel(pred_ref, targ_ref, out_ref, inter_ref, union_ref, *,
                      label_weights, tot_weight, eps):
    """pred_ref: (1, C, tile_h, W) row tile of pred.
    targ_ref: (1, C, H, tile_h) column tile of target.
    out_ref : (1, 1, 1) per-batch weighted dice (resident across spatial axis).
    inter_ref / union_ref: (C, 1, 1) f32 VMEM partial-sum accumulators.
    """
    s = pl.program_id(1)
    n_cls = len(label_weights)

    @pl.when(s == 0)
    def _():
        out_ref[...] = jnp.zeros_like(out_ref)
        inter_ref[...] = jnp.zeros_like(inter_ref)
        union_ref[...] = jnp.zeros_like(union_ref)

    # Static unroll over the 2-3 contributing classes.
    for c in range(n_cls):
        p_c = pred_ref[0, c].astype(jnp.float32)          # (tile_h, W)
        t_c = targ_ref[0, c].astype(jnp.float32)          # (H, tile_h)
        t_t = jnp.transpose(t_c)                          # (tile_h, H) == (tile_h, W)
        # intersection against target.transpose(2, 3)
        inter_ref[c] += jnp.sum(p_c * t_t, keepdims=True)
        # merged union reduce: one XLU pass instead of two
        union_ref[c] += jnp.sum(p_c + t_t, keepdims=True)

    @pl.when(s == pl.num_programs(1) - 1)
    def _():
        weighted = jnp.zeros((1, 1), jnp.float32)
        for c, w in enumerate(label_weights):
            dice_c = (2.0 * inter_ref[c] + eps) / (union_ref[c] + eps)
            weighted = weighted + w * dice_c
        out_ref[0] = weighted * (1.0 / tot_weight)


def _pick_tile_h(H, W, C, bytes_per_row_pair, *, budget_bytes=6 << 20,
                 max_tile=512):
    """Largest spatial row-tile (multiple of 128, divisor of H) inside budget."""
    if H % 128 != 0:
        return H                      # fall back to a full-plane block
    cap = min(H, max_tile, max(128, budget_bytes // bytes_per_row_pair))
    tile = 128
    for t in range(128, cap + 1, 128):
        if H % t == 0:
            tile = t
    return tile


def dice_loss(pred, target, *, mask_labels_numeric, mask_class_weights_dict,
              dimension=2, interpret=False):
    """Equivalent of DiceLoss(classes, dimension=2, ..., is_metric=False).forward."""
    assert dimension == 2, "kernel implements the 2-D (H, W) case"
    B, C, H, W = pred.shape
    assert target.shape == pred.shape
    assert H == W, "target.transpose(2, 3) must match pred's shape => H == W"

    names = ["background", "organ"]
    if "tumour" in mask_labels_numeric:
        names.append("tumour")
    label_indices = [int(mask_labels_numeric[n]) for n in names]
    label_weights = tuple(float(mask_class_weights_dict[n]) for n in names)
    tot_weight = float(sum(mask_class_weights_dict.values()))

    # Only DMA channels that contribute to the loss (ordered as `names`).
    if label_indices != list(range(C)):
        idx = jnp.asarray(label_indices, dtype=jnp.int32)
        pred = jnp.take(pred, idx, axis=1)
        target = jnp.take(target, idx, axis=1)
    Cu = len(label_indices)

    p_item = jnp.dtype(pred.dtype).itemsize
    t_item = jnp.dtype(target.dtype).itemsize
    bytes_per_row_pair = Cu * W * (p_item + t_item)
    tile_h = _pick_tile_h(H, W, Cu, bytes_per_row_pair)
    n_s = H // tile_h

    block_bytes = Cu * tile_h * W * p_item + Cu * H * tile_h * t_item
    # double-buffered inputs + scratch/output headroom
    vmem_limit = int(max(32 << 20, 4 * block_bytes))

    kernel = functools.partial(
        _dice_loss_kernel,
        label_weights=label_weights,
        tot_weight=tot_weight,
        eps=1e-10,
    )

    per_batch = pl.pallas_call(
        kernel,
        out_shape=jax.ShapeDtypeStruct((B, 1, 1), jnp.float32),
        grid_spec=pltpu.PrefetchScalarGridSpec(
            num_scalar_prefetch=0,
            grid=(B, n_s),
            in_specs=[
                # pred: row tile of the (H, W) plane
                pl.BlockSpec((1, Cu, tile_h, W), lambda b, s: (b, 0, s, 0)),
                # target: column tile (intersection pairs with target^T rows)
                pl.BlockSpec((1, Cu, H, tile_h), lambda b, s: (b, 0, 0, s)),
            ],
            out_specs=pl.BlockSpec((1, 1, 1), lambda b, s: (b, 0, 0)),
            scratch_shapes=[
                pltpu.VMEM((Cu, 1, 1), jnp.float32),   # intersection partials
                pltpu.VMEM((Cu, 1, 1), jnp.float32),   # union partials
            ],
        ),
        compiler_params=pltpu.CompilerParams(
            dimension_semantics=("parallel", "arbitrary"),
            vmem_limit_bytes=vmem_limit,
        ),
        interpret=interpret,
    )(pred, target)

    # Tiny (B,) math stays in the wrapper so the batch grid axis can run
    # megacore-parallel on v7x:  return -mean_b(weighted_dice_b)
    return -jnp.mean(per_batch[:, 0, 0])


if __name__ == "__main__":
    # Deterministic small example consistent with the module:
    # classes=2 (background / organ), dimension=2, is_metric=False.
    B, C, H, W = 2, 2, 16, 16
    key = jax.random.PRNGKey(0)
    k1, k2 = jax.random.split(key)

    logits = jax.random.normal(k1, (B, C, H, W), dtype=jnp.float32)
    # bf16 inputs halve HBM traffic for this memory-bound kernel;
    # all accumulation stays in f32 inside the kernel.
    pred = jax.nn.softmax(logits, axis=1).astype(jnp.bfloat16)     # NCHW soft preds
    labels = jax.random.randint(k2, (B, H, W), 0, C)
    target = jnp.transpose(jax.nn.one_hot(labels, C, dtype=jnp.bfloat16),
                           (0, 3, 1, 2))                           # NCHW one-hot

    mask_labels_numeric = {"background": 0, "organ": 1}
    mask_class_weights_dict = {"background": 1.0, "organ": 4.0}

    loss = dice_loss(pred, target,
                     mask_labels_numeric=mask_labels_numeric,
                     mask_class_weights_dict=mask_class_weights_dict)
    loss = jax.block_until_ready(loss)

    # Pure-JAX reference of the same (is_metric=False) forward path,
    # on the same bf16 inputs with f32 math.
    eps = 1e-10
    p32 = pred.astype(jnp.float32)
    t32 = target.astype(jnp.float32)
    t_t = jnp.swapaxes(t32, 2, 3)
    inter = jnp.sum(p32 * t_t, axis=(2, 3))
    union = jnp.sum(p32, axis=(2, 3)) + jnp.sum(t_t, axis=(2, 3))
    bg = (2.0 * inter[:, 0] + eps) / (union[:, 0] + eps)
    org = (2.0 * inter[:, 1] + eps) / (union[:, 1] + eps)
    ref = -jnp.mean((bg * 1.0 + org * 4.0) / 5.0)

    assert jnp.allclose(loss, ref, rtol=1e-5, atol=1e-6), (float(loss), float(ref))
    print("KERNEL_OK")
</pallas_src>

<mosaic_0001>
module attributes {stable_mosaic.version = 11 : i64} {
  func.func @_dice_loss_kernel(%arg0: i32, %arg1: i32, %arg2: memref<1x2x16x16xbf16, #tpu.memory_space<vmem>>, %arg3: memref<1x2x16x16xbf16, #tpu.memory_space<vmem>>, %arg4: memref<1x1x1xf32, #tpu.memory_space<vmem>>, %arg5: memref<2x1x1xf32, #tpu.memory_space<vmem>>, %arg6: memref<2x1x1xf32, #tpu.memory_space<vmem>>) attributes {dimension_semantics = [#tpu.dimension_semantics<parallel>, #tpu.dimension_semantics<arbitrary>], iteration_bounds = array<i64: 2, 1>, scalar_prefetch = 0 : i64, scratch_operands = 2 : i64, tpu.core_type = #tpu.core_type<tc>, window_params = [{transform_indices = @transform_0, window_bounds = array<i64: 1, 2, 16, 16>}, {transform_indices = @transform_1, window_bounds = array<i64: 1, 2, 16, 16>}, {transform_indices = @transform_2, window_bounds = array<i64: 1, 1, 1>}]} {
    %c0_i32 = arith.constant 0 : i32
    %0 = arith.cmpi eq, %arg1, %c0_i32 : i32
    %1 = arith.extui %0 : i1 to i32
    %c0_i32_0 = arith.constant 0 : i32
    %2 = arith.cmpi ne, %1, %c0_i32_0 : i32
    scf.if %2 {
      %cst_44 = arith.constant 0.000000e+00 : f32
      %68 = vector.broadcast %cst_44 : f32 to vector<1x1x1xf32>
      %c0_45 = arith.constant 0 : index
      %c0_46 = arith.constant 0 : index
      %c0_47 = arith.constant 0 : index
      %69 = vector.load %arg4[%c0_45, %c0_46, %c0_47] : memref<1x1x1xf32, #tpu.memory_space<vmem>>, vector<1x1x1xf32>
      tpu.vector_store %arg4[%c0_45, %c0_46, %c0_47], %68 {strides = array<i32>} : memref<1x1x1xf32, #tpu.memory_space<vmem>>, vector<1x1x1xf32>,
      %cst_48 = arith.constant 0.000000e+00 : f32
      %70 = vector.broadcast %cst_48 : f32 to vector<2x1x1xf32>
      %c0_49 = arith.constant 0 : index
      %c0_50 = arith.constant 0 : index
      %c0_51 = arith.constant 0 : index
      %71 = vector.load %arg5[%c0_49, %c0_50, %c0_51] : memref<2x1x1xf32, #tpu.memory_space<vmem>>, vector<2x1x1xf32>
      tpu.vector_store %arg5[%c0_49, %c0_50, %c0_51], %70 {strides = array<i32>} : memref<2x1x1xf32, #tpu.memory_space<vmem>>, vector<2x1x1xf32>,
      %cst_52 = arith.constant 0.000000e+00 : f32
      %72 = vector.broadcast %cst_52 : f32 to vector<2x1x1xf32>
      %c0_53 = arith.constant 0 : index
      %c0_54 = arith.constant 0 : index
      %c0_55 = arith.constant 0 : index
      %73 = vector.load %arg6[%c0_53, %c0_54, %c0_55] : memref<2x1x1xf32, #tpu.memory_space<vmem>>, vector<2x1x1xf32>
      tpu.vector_store %arg6[%c0_53, %c0_54, %c0_55], %72 {strides = array<i32>} : memref<2x1x1xf32, #tpu.memory_space<vmem>>, vector<2x1x1xf32>,
    } else {
    }
    %c0 = arith.constant 0 : index
    %c0_1 = arith.constant 0 : index
    %c0_2 = arith.constant 0 : index
    %c0_3 = arith.constant 0 : index
    %3 = vector.load %arg2[%c0, %c0_1, %c0_2, %c0_3] : memref<1x2x16x16xbf16, #tpu.memory_space<vmem>>, vector<1x1x16x16xbf16>
    %4 = vector.shape_cast %3 : vector<1x1x16x16xbf16> to vector<16x16xbf16>
    %5 = arith.extf %4 : vector<16x16xbf16> to vector<16x16xf32>
    %c0_4 = arith.constant 0 : index
    %c0_5 = arith.constant 0 : index
    %c0_6 = arith.constant 0 : index
    %c0_7 = arith.constant 0 : index
    %6 = vector.load %arg3[%c0_4, %c0_5, %c0_6, %c0_7] : memref<1x2x16x16xbf16, #tpu.memory_space<vmem>>, vector<1x1x16x16xbf16>
    %7 = vector.shape_cast %6 : vector<1x1x16x16xbf16> to vector<16x16xbf16>
    %8 = arith.extf %7 : vector<16x16xbf16> to vector<16x16xf32>
    %9 = tpu.transpose %8, [1, 0] : vector<16x16xf32> -> vector<16x16xf32>
    %c0_8 = arith.constant 0 : index
    %c0_9 = arith.constant 0 : index
    %c0_10 = arith.constant 0 : index
    %10 = vector.load %arg5[%c0_8, %c0_9, %c0_10] : memref<2x1x1xf32, #tpu.memory_space<vmem>>, vector<1x1x1xf32>
    %11 = vector.shape_cast %10 : vector<1x1x1xf32> to vector<1x1xf32>
    %12 = arith.mulf %5, %9 : vector<16x16xf32>
    %13 = vector.shape_cast %12 : vector<16x16xf32> to vector<1x16x16xf32>
    %cst = arith.constant dense<0.000000e+00> : vector<1xf32>
    %14 = vector.multi_reduction <add>, %13, %cst [1, 2] : vector<1x16x16xf32> to vector<1xf32>
    %15 = vector.shape_cast %14 : vector<1xf32> to vector<1x1x1xf32>
    %16 = vector.extract %15[0, 0, 0] : f32 from vector<1x1x1xf32>
    %17 = vector.broadcast %16 : f32 to vector<1x1xf32>
    %18 = arith.addf %11, %17 : vector<1x1xf32>
    %c0_11 = arith.constant 0 : index
    %c0_12 = arith.constant 0 : index
    %c0_13 = arith.constant 0 : index
    %19 = vector.load %arg5[%c0_11, %c0_12, %c0_13] : memref<2x1x1xf32, #tpu.memory_space<vmem>>, vector<1x1x1xf32>
    %20 = vector.shape_cast %19 : vector<1x1x1xf32> to vector<1x1xf32>
    %21 = vector.shape_cast %18 : vector<1x1xf32> to vector<1x1x1xf32>
    tpu.vector_store %arg5[%c0_11, %c0_12, %c0_13], %21 {strides = array<i32>} : memref<2x1x1xf32, #tpu.memory_space<vmem>>, vector<1x1x1xf32>,
    %c0_14 = arith.constant 0 : index
    %c0_15 = arith.constant 0 : index
    %c0_16 = arith.constant 0 : index
    %22 = vector.load %arg6[%c0_14, %c0_15, %c0_16] : memref<2x1x1xf32, #tpu.memory_space<vmem>>, vector<1x1x1xf32>
    %23 = vector.shape_cast %22 : vector<1x1x1xf32> to vector<1x1xf32>
    %24 = arith.addf %5, %9 : vector<16x16xf32>
    %25 = vector.shape_cast %24 : vector<16x16xf32> to vector<1x16x16xf32>
    %cst_17 = arith.constant dense<0.000000e+00> : vector<1xf32>
    %26 = vector.multi_reduction <add>, %25, %cst_17 [1, 2] : vector<1x16x16xf32> to vector<1xf32>
    %27 = vector.shape_cast %26 : vector<1xf32> to vector<1x1x1xf32>
    %28 = vector.extract %27[0, 0, 0] : f32 from vector<1x1x1xf32>
    %29 = vector.broadcast %28 : f32 to vector<1x1xf32>
    %30 = arith.addf %23, %29 : vector<1x1xf32>
    %c0_18 = arith.constant 0 : index
    %c0_19 = arith.constant 0 : index
    %c0_20 = arith.constant 0 : index
    %31 = vector.load %arg6[%c0_18, %c0_19, %c0_20] : memref<2x1x1xf32, #tpu.memory_space<vmem>>, vector<1x1x1xf32>
    %32 = vector.shape_cast %31 : vector<1x1x1xf32> to vector<1x1xf32>
    %33 = vector.shape_cast %30 : vector<1x1xf32> to vector<1x1x1xf32>
    tpu.vector_store %arg6[%c0_18, %c0_19, %c0_20], %33 {strides = array<i32>} : memref<2x1x1xf32, #tpu.memory_space<vmem>>, vector<1x1x1xf32>,
    %c0_21 = arith.constant 0 : index
    %c1 = arith.constant 1 : index
    %c0_22 = arith.constant 0 : index
    %c0_23 = arith.constant 0 : index
    %34 = vector.load %arg2[%c0_21, %c1, %c0_22, %c0_23] : memref<1x2x16x16xbf16, #tpu.memory_space<vmem>>, vector<1x1x16x16xbf16>
    %35 = vector.shape_cast %34 : vector<1x1x16x16xbf16> to vector<16x16xbf16>
    %36 = arith.extf %35 : vector<16x16xbf16> to vector<16x16xf32>
    %c0_24 = arith.constant 0 : index
    %c1_25 = arith.constant 1 : index
    %c0_26 = arith.constant 0 : index
    %c0_27 = arith.constant 0 : index
    %37 = vector.load %arg3[%c0_24, %c1_25, %c0_26, %c0_27] : memref<1x2x16x16xbf16, #tpu.memory_space<vmem>>, vector<1x1x16x16xbf16>
    %38 = vector.shape_cast %37 : vector<1x1x16x16xbf16> to vector<16x16xbf16>
    %39 = arith.extf %38 : vector<16x16xbf16> to vector<16x16xf32>
    %40 = tpu.transpose %39, [1, 0] : vector<16x16xf32> -> vector<16x16xf32>
    %c1_28 = arith.constant 1 : index
    %c0_29 = arith.constant 0 : index
    %c0_30 = arith.constant 0 : index
    %41 = vector.load %arg5[%c1_28, %c0_29, %c0_30] : memref<2x1x1xf32, #tpu.memory_space<vmem>>, vector<1x1x1xf32>
    %42 = vector.shape_cast %41 : vector<1x1x1xf32> to vector<1x1xf32>
    %43 = arith.mulf %36, %40 : vector<16x16xf32>
    %44 = vector.shape_cast %43 : vector<16x16xf32> to vector<1x16x16xf32>
    %cst_31 = arith.constant dense<0.000000e+00> : vector<1xf32>
    %45 = vector.multi_reduction <add>, %44, %cst_31 [1, 2] : vector<1x16x16xf32> to vector<1xf32>
    %46 = vector.shape_cast %45 : vector<1xf32> to vector<1x1x1xf32>
    %47 = vector.extract %46[0, 0, 0] : f32 from vector<1x1x1xf32>
    %48 = vector.broadcast %47 : f32 to vector<1x1xf32>
    %49 = arith.addf %42, %48 : vector<1x1xf32>
    %c1_32 = arith.constant 1 : index
    %c0_33 = arith.constant 0 : index
    %c0_34 = arith.constant 0 : index
    %50 = vector.load %arg5[%c1_32, %c0_33, %c0_34] : memref<2x1x1xf32, #tpu.memory_space<vmem>>, vector<1x1x1xf32>
    %51 = vector.shape_cast %50 : vector<1x1x1xf32> to vector<1x1xf32>
    %52 = vector.shape_cast %49 : vector<1x1xf32> to vector<1x1x1xf32>
    tpu.vector_store %arg5[%c1_32, %c0_33, %c0_34], %52 {strides = array<i32>} : memref<2x1x1xf32, #tpu.memory_space<vmem>>, vector<1x1x1xf32>,
    %c1_35 = arith.constant 1 : index
    %c0_36 = arith.constant 0 : index
    %c0_37 = arith.constant 0 : index
    %53 = vector.load %arg6[%c1_35, %c0_36, %c0_37] : memref<2x1x1xf32, #tpu.memory_space<vmem>>, vector<1x1x1xf32>
    %54 = vector.shape_cast %53 : vector<1x1x1xf32> to vector<1x1xf32>
    %55 = arith.addf %36, %40 : vector<16x16xf32>
    %56 = vector.shape_cast %55 : vector<16x16xf32> to vector<1x16x16xf32>
    %cst_38 = arith.constant dense<0.000000e+00> : vector<1xf32>
    %57 = vector.multi_reduction <add>, %56, %cst_38 [1, 2] : vector<1x16x16xf32> to vector<1xf32>
    %58 = vector.shape_cast %57 : vector<1xf32> to vector<1x1x1xf32>
    %59 = vector.extract %58[0, 0, 0] : f32 from vector<1x1x1xf32>
    %60 = vector.broadcast %59 : f32 to vector<1x1xf32>
    %61 = arith.addf %54, %60 : vector<1x1xf32>
    %c1_39 = arith.constant 1 : index
    %c0_40 = arith.constant 0 : index
    %c0_41 = arith.constant 0 : index
    %62 = vector.load %arg6[%c1_39, %c0_40, %c0_41] : memref<2x1x1xf32, #tpu.memory_space<vmem>>, vector<1x1x1xf32>
    %63 = vector.shape_cast %62 : vector<1x1x1xf32> to vector<1x1xf32>
    %64 = vector.shape_cast %61 : vector<1x1xf32> to vector<1x1x1xf32>
    tpu.vector_store %arg6[%c1_39, %c0_40, %c0_41], %64 {strides = array<i32>} : memref<2x1x1xf32, #tpu.memory_space<vmem>>, vector<1x1x1xf32>,
    %c0_i32_42 = arith.constant 0 : i32
    %65 = arith.cmpi eq, %arg1, %c0_i32_42 : i32
    %66 = arith.extui %65 : i1 to i32
    %c0_i32_43 = arith.constant 0 : i32
    %67 = arith.cmpi ne, %66, %c0_i32_43 : i32
    scf.if %67 {
      %cst_44 = arith.constant 0.000000e+00 : f32
      %68 = vector.broadcast %cst_44 : f32 to vector<1x1xf32>
      %c0_45 = arith.constant 0 : index
      %c0_46 = arith.constant 0 : index
      %c0_47 = arith.constant 0 : index
      %69 = vector.load %arg5[%c0_45, %c0_46, %c0_47] : memref<2x1x1xf32, #tpu.memory_space<vmem>>, vector<1x1x1xf32>
      %70 = vector.shape_cast %69 : vector<1x1x1xf32> to vector<1x1xf32>
      %cst_48 = arith.constant 2.000000e+00 : f32
      %71 = vector.broadcast %cst_48 : f32 to vector<1x1xf32>
      %72 = arith.mulf %71, %70 : vector<1x1xf32>
      %cst_49 = arith.constant 1.000000e-10 : f32
      %73 = vector.broadcast %cst_49 : f32 to vector<1x1xf32>
      %74 = arith.addf %72, %73 : vector<1x1xf32>
      %c0_50 = arith.constant 0 : index
      %c0_51 = arith.constant 0 : index
      %c0_52 = arith.constant 0 : index
      %75 = vector.load %arg6[%c0_50, %c0_51, %c0_52] : memref<2x1x1xf32, #tpu.memory_space<vmem>>, vector<1x1x1xf32>
      %76 = vector.shape_cast %75 : vector<1x1x1xf32> to vector<1x1xf32>
      %cst_53 = arith.constant 1.000000e-10 : f32
      %77 = vector.broadcast %cst_53 : f32 to vector<1x1xf32>
      %78 = arith.addf %76, %77 : vector<1x1xf32>
      %79 = arith.divf %74, %78 : vector<1x1xf32>
      %cst_54 = arith.constant 1.000000e+00 : f32
      %80 = vector.broadcast %cst_54 : f32 to vector<1x1xf32>
      %81 = arith.mulf %80, %79 : vector<1x1xf32>
      %82 = arith.addf %68, %81 : vector<1x1xf32>
      %c1_55 = arith.constant 1 : index
      %c0_56 = arith.constant 0 : index
      %c0_57 = arith.constant 0 : index
      %83 = vector.load %arg5[%c1_55, %c0_56, %c0_57] : memref<2x1x1xf32, #tpu.memory_space<vmem>>, vector<1x1x1xf32>
      %84 = vector.shape_cast %83 : vector<1x1x1xf32> to vector<1x1xf32>
      %cst_58 = arith.constant 2.000000e+00 : f32
      %85 = vector.broadcast %cst_58 : f32 to vector<1x1xf32>
      %86 = arith.mulf %85, %84 : vector<1x1xf32>
      %cst_59 = arith.constant 1.000000e-10 : f32
      %87 = vector.broadcast %cst_59 : f32 to vector<1x1xf32>
      %88 = arith.addf %86, %87 : vector<1x1xf32>
      %c1_60 = arith.constant 1 : index
      %c0_61 = arith.constant 0 : index
      %c0_62 = arith.constant 0 : index
      %89 = vector.load %arg6[%c1_60, %c0_61, %c0_62] : memref<2x1x1xf32, #tpu.memory_space<vmem>>, vector<1x1x1xf32>
      %90 = vector.shape_cast %89 : vector<1x1x1xf32> to vector<1x1xf32>
      %cst_63 = arith.constant 1.000000e-10 : f32
      %91 = vector.broadcast %cst_63 : f32 to vector<1x1xf32>
      %92 = arith.addf %90, %91 : vector<1x1xf32>
      %93 = arith.divf %88, %92 : vector<1x1xf32>
      %cst_64 = arith.constant 4.000000e+00 : f32
      %94 = vector.broadcast %cst_64 : f32 to vector<1x1xf32>
      %95 = arith.mulf %94, %93 : vector<1x1xf32>
      %96 = arith.addf %82, %95 : vector<1x1xf32>
      %cst_65 = arith.constant 2.000000e-01 : f32
      %97 = vector.broadcast %cst_65 : f32 to vector<1x1xf32>
      %98 = arith.mulf %96, %97 : vector<1x1xf32>
      %c0_66 = arith.constant 0 : index
      %c0_67 = arith.constant 0 : index
      %c0_68 = arith.constant 0 : index
      %99 = vector.load %arg4[%c0_66, %c0_67, %c0_68] : memref<1x1x1xf32, #tpu.memory_space<vmem>>, vector<1x1x1xf32>
      %100 = vector.shape_cast %99 : vector<1x1x1xf32> to vector<1x1xf32>
      %101 = vector.shape_cast %98 : vector<1x1xf32> to vector<1x1x1xf32>
      tpu.vector_store %arg4[%c0_66, %c0_67, %c0_68], %101 {strides = array<i32>} : memref<1x1x1xf32, #tpu.memory_space<vmem>>, vector<1x1x1xf32>,
    } else {
    }
    return
  }
  func.func @transform_0(%arg0: i32, %arg1: i32) -> (i32, i32, i32, i32) {
    %c0_i32 = arith.constant 0 : i32
    %c0_i32_0 = arith.constant 0 : i32
    %c0_i32_1 = arith.constant 0 : i32
    return %arg0, %c0_i32, %arg1, %c0_i32_0 : i32, i32, i32, i32
  }
  func.func @transform_1(%arg0: i32, %arg1: i32) -> (i32, i32, i32, i32) {
    %c0_i32 = arith.constant 0 : i32
    %c0_i32_0 = arith.constant 0 : i32
    %c0_i32_1 = arith.constant 0 : i32
    return %arg0, %c0_i32, %c0_i32_0, %arg1 : i32, i32, i32, i32
  }
  func.func @transform_2(%arg0: i32, %arg1: i32) -> (i32, i32, i32) {
    %c0_i32 = arith.constant 0 : i32
    %c0_i32_0 = arith.constant 0 : i32
    %c0_i32_1 = arith.constant 0 : i32
    return %arg0, %c0_i32, %c0_i32_0 : i32, i32, i32
  }
}

</mosaic_0001>

<bundles_post_ra>
// kernel: tpu_custom_call.1
= control target key start
LH: loop header
LB: loop body
LE: loop exit
PB: predicated region body
PF: predicated region fallthrough
CT: control target
= control target key end

     0   :  { %7 = vsyncpa [#allocation5], 0  ;;  %s913_s0 = inlined_call_operand.hbm [shape: bf16[2,2,16,16], index: 0, kind: input, shape index: {}]   ;;  %s914_s1 = inlined_call_operand.hbm [shape: bf16[2,2,16,16], index: 1, kind: input, shape index: {}]   ;;  %s915_s2 = inlined_call_operand.vmem [shape: f32[2,1,1], index: 2, kind: output, shape index: {}]  }
   0x1   :  { %9 = vsyncpa [#allocation5 + $0x1], 0 }
   0x2   :  { %10 = vsyncpa [#allocation7], 0 }
   0x3   :  { %12 = vsyncpa [#allocation7 + $0x1], 0  ;;  %s765_s9 = smov 0   ;;  %s767_s10 = smov 0  }
   0x4   :  { %s769_s11 = smov 0   ;;  %s771_s12 = smov 0  }
   0x5   :  { %s773_s13 = smov 0   ;;  %s775_s14 = smov 0  }
   0x6 LB: > { %s505_s15 = sadd.s32 4294967295, %s743_s14   ;;  %s30_s16 = sadd.s32 1, %s739_s13  ;;  %s743_s14 = sphi %s775_s14, %s18_s14   ;;  %s739_s13 = sphi %s773_s13, %s924_s13   ;;  %s735_s12 = sphi %s771_s12, %s923_s12   ;;  %s731_s11 = sphi %s769_s11, %s922_s11   ;;  %s727_s10 = sphi %s767_s10, %s921_s10   ;;  %s723_s9 = sphi %s765_s9, %s920_s9  }
   0x7   : > { %p32_p0 = scmp.ge.s32.totalorder %s30_s16, 2  ;;  %s39_s17 = sadd.s32 1, %s731_s11 }
   0x8   : > { %p46_p1 = scmp.ne.s32.totalorder %s731_s11, %s727_s10  ;;  %p47_p2 = scmp.eq.s32.totalorder %s743_s14, 0 }
   0x9   : > { %s926_s16 = smov (%p32_p0, %s30_s16), 0  ;;  %p52_p4 = scmp.ne.s32.totalorder %s727_s10, %s723_s9 }
   0xa   : > { %p801_p3 = por %p47_p2, %p46_p1  ;;  %s34_s19 = ssub.s32 %s739_s13, %s926_s16 }
   0xb   : > { %p53_p5 = scmp.eq.s32.totalorder %s505_s15, 0  ;;  %p37_p6 = scmp.eq.s32.totalorder %s34_s19, 0 }
   0xc   : > { %p563_p8 = scmp.lt.s32.totalorder %s743_s14, 2  ;;  %s817_s22 = sand.u32 1, %s731_s11  }
   0xd   : > { %p808_p7 = por %p53_p5, %p52_p4  ;;  %s524_s23 = sshll.u32 %s739_s13, 8 }
   0xe   : > { %s814_s21 = scalar_select %p37_p6, %s731_s11, %s39_s17  }
   0xf   : > { %s509_s24 = sshll.u32 %s817_s22, 4  ;;  %s142_s27 = scalar_lea.hbm %s913_s0, %s524_s23 }
  0x10   : > { %s134_s28 = scalar_lea.vmem [#allocation4], %s509_s24  ;;  %p828_p9 = pnand %p563_p8, %p801_p3 }
  0x11   : > { %s143_s29 = sshll.u32 %s134_s28, 4  ;;  %s131_s3 = scalar_lea.sflag [#allocation5], %s817_s22  ;;  %s144_s29 = int_to_ptr.vmem [resolvable:$true] %s143_s29 }
  0x12   : > { %p635_p10 = pneg %p828_p9  ;;  %s646_s4 = scalar_lea.vmem %s144_s29, 256 }
  0x13   : > { %p647_p11 = scmp.ne.s32.totalorder %s144_s29, %s646_s4  ;;  %s745_s5 = smov [#allocation4]  }
  0x14   : > { %s651_s6 = sshll.u32 %s745_s5, 4  ;;  %s652_s6 = int_to_ptr.vmem [resolvable:$false] %s651_s6 }
  0x15   : > { %p649_p12 = pnand %p647_p11, %p635_p10  ;;  %s653_s7 = scalar_lea.vmem %s652_s6, 512 }
  0x16   : > { %p654_p0 = scmp.lt.s32.totalorder %s144_s29, %s652_s6  ;;  %p655_p1 = scmp.lt.s32.totalorder %s653_s7, %s646_s4 }
  0x17   : > { %p650_p13 = pneg %p649_p12 }
  0x18   : > { %p656_p2 = por %p655_p1, %p654_p0 }
  0x1a   : > { %p657_p3 = pnand %p656_p2, %p650_p13 }
  0x1c   : > { %660 = shalt.err (!%p657_p3)
}
  0x1d   : > { %s746_s8 = smov 64   ;;  %s747_s9 = smov 4  }
  0x1e   : > { %559 = dma.hbm_to_vmem [thread:$0]  (!%p828_p9), %s142_s27, 256, %s144_s29, %s131_s3, %s746_s8, %s746_s8, %s747_s9  }
  0x1f   : > { %p515_p4 = scmp.ge.s32.totalorder %s743_s14, 1  ;;  %p173_p5 = scmp.lt.s32.totalorder %s743_s14, 3 }
  0x20   : > { %s164_s19 = scalar_lea.hbm %s914_s1, %s524_s23  ;;  %s157_s25 = scalar_lea.vmem [#allocation6], %s509_s24 }
  0x21   : > { %p842_p6 = pnand %p515_p4, %p173_p5  ;;  %s165_s26 = sshll.u32 %s157_s25, 4  ;;  %s166_s26 = int_to_ptr.vmem [resolvable:$true] %s165_s26 }
  0x22   : > { %s154_s28 = scalar_lea.sflag [#allocation7], %s817_s22  ;;  %s674_s4 = scalar_lea.vmem %s166_s26, 256 }
  0x23   : > { %p675_p8 = scmp.ne.s32.totalorder %s166_s26, %s674_s4  ;;  %s748_s27 = smov [#allocation6]  }
  0x24   : > { %s679_s29 = sshll.u32 %s748_s27, 4  ;;  %s680_s29 = int_to_ptr.vmem [resolvable:$false] %s679_s29 }
  0x25   : > { %p677_p11 = pnand %p675_p8, %p635_p10  ;;  %s681_s3 = scalar_lea.vmem %s680_s29, 512 }
  0x26   : > { %p682_p13 = scmp.lt.s32.totalorder %s166_s26, %s680_s29  ;;  %p683_p0 = scmp.lt.s32.totalorder %s681_s3, %s674_s4 }
  0x27   : > { %p678_p12 = pneg %p677_p11 }
  0x28   : > { %p684_p1 = por %p683_p0, %p682_p13 }
  0x2a   : > { %p685_p2 = pnand %p684_p1, %p678_p12 }
  0x2c   : > { %688 = shalt.err (!%p685_p2)
}
  0x2d   : > { %562 = dma.hbm_to_vmem [thread:$0]  (!%p828_p9), %s164_s19, 256, %s166_s26, %s154_s28, %s746_s8, %s746_s8, %s747_s9  }
  0x2e   : > { %177 = sbr.rel (%p842_p6) target bundleno = 439 (0x1b7), region = 28  ;;  %s179_s22 = sand.u32 (!%p842_p6), 1, %s727_s10  }
  0x2f   : > { %s516_s23 = sshll.u32 (!%p842_p6), %s179_s22, 4  ;;  %s180_s24 = scalar_lea.sflag (!%p842_p6), [#allocation5], %s179_s22 }
  0x30   : > { %s183_s5 = scalar_lea.vmem (!%p842_p6), [#allocation4], %s516_s23 }
  0x33   : > { %714 = dma.done.wait (%p808_p7), %s180_s24, 256  }
  0x34   : > { %716 = vsyncadd (%p808_p7), %s180_s24, 4294967040  ;;  %s189_s6 = scalar_lea.sflag [#allocation7], %s179_s22  ;;  %s192_s7 = scalar_lea.vmem [#allocation6], %s516_s23 }
  0x35   : > { %718 = dma.done.wait (%p808_p7), %s189_s6, 256  }
  0x36   : > { %720 = vsyncadd (%p808_p7), %s189_s6, 4294967040  ;;  %v531_v0 = vld [vmem:[%s192_s7] sm:$0xff]   ;;  %v543_v1 = vld [vmem:[%s192_s7 + $0x8] sm:$0xff]   ;;  %vm273_vm0 = vcmask 130048   ;;  %p217_p7 = scmp.lt.s32.totalorder %s735_s12, 1  ;;  %vm224_vm1 = vcmask 0  }
  0x37   : > { %v532_v2 = vunpack.c.l.bf16 %v531_v0  ;;  %v540_v3 = vunpack.c.l.bf16 %v543_v1  ;;  %v533_v4 = vunpack.c.h.bf16 %v531_v0  ;;  %v541_v5 = vunpack.c.h.bf16 %v543_v1  ;;  %v542_v8 = vld [vmem:[%s183_s5 + $0x8] sm:$0xff]   ;;  %v527_v9 = vld [vmem:[%s183_s5] sm:$0xff]  }
  0x38   : > { %v536_v12 = vunpack.c.l.bf16 %v542_v8  ;;  %v528_v14 = vunpack.c.l.bf16 %v527_v9  ;;  %v537_v15 = vunpack.c.h.bf16 %v542_v8  ;;  %v529_v17 = vunpack.c.h.bf16 %v527_v9  ;;  %s928_s12 = smov (!%p217_p7, %s735_s12), 1 }
  0x39   : > { %v615_v6 = vpack.i.bf16 %v540_v3, %v532_v2  ;;  %v617_v7 = vpack.i.bf16 %v541_v5, %v533_v4  ;;  %v749_v40 = vmov 0.0   ;;  %s885_s8 = scalar_lea.vmem %s915_s2, %s928_s12 }
  0x3a   : > { %226 = vst.msk [vmem:[#allocation2] sm:$0x1] %vm224_vm1, %v749_v40  ;;  %227 = vst.msk [vmem:[#allocation2 + $0x1] sm:$0x1] %vm224_vm1, %v749_v40 }
  0x3b   : > { %616 = vxpose.xlu0.b32.start [1/2] (short) (narrow) %v615_v6, 16  ;;  %228 = vst.msk [vmem:[#allocation3] sm:$0x1] %vm224_vm1, %v749_v40  ;;  %229 = vst.msk [vmem:[#allocation3 + $0x1] sm:$0x1] %vm224_vm1, %v749_v40 }
  0x3c   : > { %225 = vst.msk [vmem:[%s885_s8] sm:$0x1] %vm224_vm1, %v749_v40 }
  0x3f   : > { %618 = vxpose.xlu0.b32.end [2/2] (short) (narrow) %v617_v7, 16 }
  0x41   : > { %v270_v5 = vld [vmem:[#allocation2] sm:$0x1]  ;;  %v351_v9 = vld [vmem:[#allocation2 + $0x1] sm:$0x1] }
  0x42   : > { %v290_v8 = vld [vmem:[#allocation3] sm:$0x1] }
  0xb7   : > { %v619_v10 = vpop.trf.xlu0 }
  0xb8   : > { %v623_v11 = vunpack.i.h.bf16 %v619_v10  ;;  %v620_v13 = vunpack.i.l.bf16 %v619_v10 }
  0xba   : > { %v352_v19 = vmul.f32 %v623_v11, %v536_v12  ;;  %v271_v21 = vmul.f32 %v620_v13, %v528_v14  ;;  %v291_v30 = vadd.f32 %v620_v13, %v528_v14  ;;  %v371_v35 = vadd.f32 %v623_v11, %v536_v12  ;;  %v370_v14 = vld [vmem:[#allocation3 + $0x1] sm:$0x1] }
  0xbb   : > { %v624_v16 = vpop.trf.xlu0 }
  0xbc   : > { %v628_v18 = vunpack.i.h.bf16 %v624_v16  ;;  %v625_v20 = vunpack.i.l.bf16 %v624_v16  ;;  %v354_v25 = vsel %vm273_vm0, %v352_v19, 0.0  ;;  %v274_v28 = vsel %vm273_vm0, %v271_v21, 0.0 }
  0xbd   : > { %v293_v34 = vsel %vm273_vm0, %v291_v30, 0.0  ;;  %v373_v38 = vsel %vm273_vm0, %v371_v35, 0.0 }
  0xbe   : > { %v353_v22 = vmul.f32 %v628_v18, %v537_v15  ;;  %v272_v23 = vmul.f32 %v625_v20, %v529_v17  ;;  %v292_v24 = vadd.f32 %v625_v20, %v529_v17  ;;  %v372_v33 = vadd.f32 %v628_v18, %v537_v15 }
  0xc0   : > { %v355_v26 = vsel %vm273_vm0, %v353_v22, 0.0  ;;  %v275_v29 = vsel %vm273_vm0, %v272_v23, 0.0  ;;  %v294_v32 = vsel %vm273_vm0, %v292_v24, 0.0  ;;  %v374_v37 = vsel %vm273_vm0, %v372_v33, 0.0 }
  0xc1   : > { %v356_v27 = vadd.f32 %v355_v26, %v354_v25  ;;  %v276_v31 = vadd.f32 %v275_v29, %v274_v28  ;;  %v295_v36 = vadd.f32 %v294_v32, %v293_v34  ;;  %v375_v39 = vadd.f32 %v374_v37, %v373_v38 }
  0xc3   : > { %357 = vadd.xlane.f32.xlu0 %v356_v27  ;;  %277 = vadd.xlane.f32.xlu1 %v276_v31 }
  0xc7   : > { %296 = vadd.xlane.f32.xlu1 %v295_v36 }
  0xcb   : > { %376 = vadd.xlane.f32.xlu1 %v375_v39 }
 0x14c   : > { %v358_v41 = vpop.xlane.xlu0 %357  ;;  %v278_v43 = vpop.xlane.xlu1 %277 }
 0x14d   : > { %v359_v42 = vrot.slane %v358_v41, 4  ;;  %v279_v44 = vrot.slane %v278_v43, 4 }
 0x14f   : > { %v360_v45 = vadd.f32 %v359_v42, %v358_v41  ;;  %v280_v46 = vadd.f32 %v279_v44, %v278_v43 }
 0x150   : > { %v297_v48 = vpop.xlane.xlu1 %296 }
 0x151   : > { %v361_v47 = vrot.slane %v360_v45, 2  ;;  %v281_v49 = vrot.slane %v280_v46, 2  ;;  %v298_v50 = vrot.slane %v297_v48, 4 }
 0x153   : > { %v299_v51 = vadd.f32 %v298_v50, %v297_v48  ;;  %v282_v52 = vadd.f32 %v281_v49, %v280_v46  ;;  %v362_v53 = vadd.f32 %v361_v47, %v360_v45 }
 0x154   : > { %v377_v54 = vpop.xlane.xlu1 %376 }
 0x155   : > { %v300_v55 = vrot.slane %v299_v51, 2  ;;  %v378_v56 = vrot.slane %v377_v54, 4  ;;  %v283_v57 = vrot.slane %v282_v52, 1  ;;  %v363_v61 = vrot.slane %v362_v53, 1 }
 0x157   : > { %v379_v58 = vadd.f32 %v378_v56, %v377_v54  ;;  %v284_v59 = vadd.f32 %v283_v57, %v282_v52  ;;  %v301_v60 = vadd.f32 %v300_v55, %v299_v51  ;;  %v364_v2 = vadd.f32 %v363_v61, %v362_v53 }
 0x159   : > { %v380_v62 = vrot.slane %v379_v58, 2  ;;  %544 = vpush %v284_v59  ;;  %v302_v63 = vrot.slane %v301_v60, 1 }
 0x15b   : > { %v381_v0 = vadd.f32 %v380_v62, %v379_v58  ;;  %v303_v1 = vadd.f32 %v302_v63, %v301_v60 }
 0x15d   : > { %546 = vpush %v303_v1  ;;  %v382_v3 = vrot.slane %v381_v0, 1 }
 0x15e   : > { %548 = vpush %v364_v2 }
 0x15f   : > { %v383_v4 = vadd.f32 %v382_v3, %v381_v0 }
 0x161   : > { %550 = vpush %v383_v4 }
 0x18a   : > { %s545_s12 = spop %544 }
 0x18b   : > { %v286_v6 = vstv %s545_s12 }
 0x18c   : > { %v287_v7 = vadd.f32 %v286_v6, %v270_v5 }
 0x18e   : > { %289 = vst.msk [vmem:[#allocation2] sm:$0x1] %vm224_vm1, %v287_v7  ;;  %s547_s9 = spop %546 }
 0x18f   : > { %v305_v10 = vstv %s547_s9  ;;  %s549_s15 = spop %548 }
 0x190   : > { %v306_v11 = vadd.f32 %v305_v10, %v290_v8  ;;  %v366_v12 = vstv %s549_s15 }
 0x191   : > { %v367_v13 = vadd.f32 %v366_v12, %v351_v9 }
 0x192   : > { %307 = vst.msk [vmem:[#allocation3] sm:$0x1] %vm224_vm1, %v306_v11  ;;  %s551_s17 = spop %550 }
 0x193   : > { %368 = vst.msk [vmem:[#allocation2 + $0x1] sm:$0x1] %vm224_vm1, %v367_v13  ;;  %v385_v15 = vstv %s551_s17 }
 0x194   : > { %v386_v16 = vadd.f32 %v385_v15, %v370_v14 }
 0x195   : > { %v391_v22 = vld [vmem:[#allocation2] sm:$0x1] }
 0x196   : > { %387 = vst.msk [vmem:[#allocation3 + $0x1] sm:$0x1] %vm224_vm1, %v386_v16  ;;  %v392_v24 = vmul.f32 2.0, %v391_v22 }
 0x198   : > { %v393_v28 = vadd.f32 1e-10, %v392_v24 }
 0x199   : > { %v394_v17 = vld [vmem:[#allocation3] sm:$0x1] }
 0x19a   : > { %v395_v18 = vadd.f32 1e-10, %v394_v17  ;;  %v399_v21 = vld [vmem:[#allocation2 + $0x1] sm:$0x1] }
 0x19b   : > { %v400_v23 = vmul.f32 2.0, %v399_v21 }
 0x19c   : > { %629 = vrcp.f32 %v395_v18 }
 0x19d   : > { %v402_v19 = vld [vmem:[#allocation3 + $0x1] sm:$0x1]  ;;  %v401_v26 = vadd.f32 1e-10, %v400_v23 }
 0x19e   : > { %v403_v20 = vadd.f32 1e-10, %v402_v19 }
 0x1a0   : > { %631 = vrcp.f32 %v403_v20 }
 0x1a9   : > { %v630_v25 = vpop.eup %629 }
 0x1aa   : > { %v397_v30 = vmul.f32 %v630_v25, %v393_v28 }
 0x1ad   : > { %v632_v27 = vpop.eup %631 }
 0x1ae   : > { %v405_v29 = vmul.f32 %v632_v27, %v401_v26 }
 0x1b0   : > { %v406_v31 = vmul.f32 4.0, %v405_v29 }
 0x1b2   : > { %v407_v32 = vadd.f32 %v406_v31, %v397_v30 }
 0x1b4   : > { %v408_v33 = vmul.f32 0.2, %v407_v32 }
 0x1b6   : > { %409 = vst.msk [vmem:[%s885_s8] sm:$0x1] %vm224_vm1, %v408_v33 }
 0x1b7 PF: > { %s18_s14 = sadd.s32 1, %s743_s14   ;;  %s920_s9 = smov %s727_s10 }
 0x1b8   : > { %p15_p9 = scmp.ge.s32.totalorder %s18_s14, 4   ;;  %s921_s10 = smov %s731_s11 }
 0x1b9   : > { %s922_s11 = smov %s814_s21  ;;  %s923_s12 = smov %s739_s13 }
 0x1ba   : > { %s924_s13 = smov %s926_s16  ;;  %17 = sbr.rel (!%p15_p9) target bundleno = 6 (0x6), region = 93 }
 0x1bf   :  { %427 = vsyncpa [#allocation5], 1 }
 0x1c0   :  { %429 = vsyncpa [#allocation5 + $0x1], 1 }
 0x1c1   :  { %430 = vsyncpa [#allocation7], 1 }
 0x1c2   :  { %432 = vsyncpa [#allocation7 + $0x1], 1 }

</bundles_post_ra>
